<compile_context>
chip_gen: v7x
topology: tpu7x:2x2x1
jax: 0.10.0
libtpu: 0.0.40
codegen_flags: <defaults>
</compile_context>

<pallas_src>
import jax
import jax.numpy as jnp
from jax.experimental import pallas as pl
from jax.experimental.pallas import tpu as pltpu

_PAD_LANE = 512                          # lane width for the padded fallback path
_TARGET_TILE_BYTES = 2 * 1024 * 1024     # ~2 MiB/block; 3 arrays x 2 bufs ~ 12 MiB VMEM
_SMALL_FAST_PATH_BYTES = 1 * 1024 * 1024 # below this, plain XLA add beats kernel dispatch


def _add_delta_kernel(x_ref, d_ref, o_ref):
    # Elementwise hot path: out = X + (mask * diff_weight)   (delta pre-folded)
    o_ref[...] = x_ref[...] + d_ref[...]


def _sublane_multiple(dtype) -> int:
    itemsize = jnp.dtype(dtype).itemsize
    if itemsize >= 4:
        return 8
    if itemsize == 2:
        return 16
    return 32


def _as_2d_lane_dense(a):
    """Return (a_2d, n_valid_elements, padded) with a lane-dense last dim.

    Prefers zero-copy reshapes (lane-dense last dim, or total size divisible by
    512/256/128); only flattens + pads as a last resort."""
    n = a.size
    if a.ndim >= 2 and a.shape[-1] % 128 == 0:
        return a.reshape(-1, a.shape[-1]), n, False
    for w in (512, 256, 128):
        if n % w == 0:
            return a.reshape(-1, w), n, False
    flat = a.reshape(-1)
    pad = (-n) % _PAD_LANE
    if pad:
        flat = jnp.pad(flat, (0, pad))
    return flat.reshape(-1, _PAD_LANE), n, True


def _pick_tiles(n_rows: int, n_cols: int, dtype, target_tile_bytes: int):
    """Choose a lane-dense (row_tile, col_tile) block of roughly target_tile_bytes."""
    sub = _sublane_multiple(dtype)
    itemsize = jnp.dtype(dtype).itemsize

    # Very wide last dim: even a minimum-height block would blow the budget ->
    # tile columns too (block stays lane-dense: col_tile is a multiple of 128).
    if sub * n_cols * itemsize > target_tile_bytes and n_cols > 128:
        col_tile = (target_tile_bytes // (sub * itemsize)) // 128 * 128
        col_tile = int(max(128, min(col_tile, n_cols)))
        return sub, col_tile

    col_tile = n_cols
    row_bytes = max(1, n_cols * itemsize)
    row_tile = max(sub, (target_tile_bytes // row_bytes) // sub * sub)
    rows_ceil = ((n_rows + sub - 1) // sub) * sub
    row_tile = int(min(row_tile, rows_ceil))

    # Megacore (v7x): if the whole array would fit one block, split into >=2
    # steps so both TensorCores get work under "parallel" semantics.
    if row_tile >= n_rows and n_rows > sub:
        half = (((n_rows + 1) // 2 + sub - 1) // sub) * sub
        row_tile = int(max(sub, min(row_tile, half)))
    return row_tile, col_tile


def diff_weight_fixmask_forward(x, delta, *, delta2d=None, active: bool = True,
                                donate_x: bool = False,
                                small_fast_path_bytes: int = _SMALL_FAST_PATH_BYTES,
                                target_tile_bytes: int = _TARGET_TILE_BYTES):
    """Pallas forward for DiffWeightFixmask: out = X + delta  (delta = mask*diff_weight).

    x:       input tensor (any shape)
    delta:   pre-folded `mask * diff_weight`, same shape as x
    delta2d: optional cached lane-dense 2-D layout of delta (skips re-layout)
    donate_x: alias the output onto x on the zero-copy path (the caller must
              jit with donation for the alias to actually avoid a copy).
    """
    if not active:
        return x
    assert x.shape == delta.shape, (x.shape, delta.shape)
    if x.size == 0:
        return x

    itemsize = jnp.dtype(x.dtype).itemsize
    if x.size * itemsize <= small_fast_path_bytes:
        # Tiny tensors: a single fused XLA add is already at roofline; skip dispatch.
        d = delta if delta.dtype == x.dtype else delta.astype(x.dtype)
        return x + d

    orig_shape = x.shape
    x2d, n_valid, padded = _as_2d_lane_dense(x)

    if delta2d is None:
        d = delta if delta.dtype == x.dtype else delta.astype(x.dtype)
        delta2d, _, _ = _as_2d_lane_dense(d)
    elif delta2d.dtype != x.dtype:
        delta2d = delta2d.astype(x.dtype)
    assert delta2d.shape == x2d.shape, (delta2d.shape, x2d.shape)

    rows, cols = x2d.shape
    row_tile, col_tile = _pick_tiles(rows, cols, x.dtype, target_tile_bytes)
    grid = (pl.cdiv(rows, row_tile), pl.cdiv(cols, col_tile))
    spec = pl.BlockSpec((row_tile, col_tile), lambda i, j: (i, j))

    cost = pl.CostEstimate(
        flops=x.size,
        transcendentals=0,
        bytes_accessed=3 * x.size * itemsize,  # 2 reads + 1 write
    )

    out2d = pl.pallas_call(
        _add_delta_kernel,
        out_shape=jax.ShapeDtypeStruct(x2d.shape, x.dtype),
        grid_spec=pltpu.PrefetchScalarGridSpec(
            num_scalar_prefetch=0,
            grid=grid,
            in_specs=[spec, spec],
            out_specs=spec,
        ),
        compiler_params=pltpu.CompilerParams(
            dimension_semantics=("parallel", "parallel"),  # v7x: shard over 2 TCs
            vmem_limit_bytes=32 * 1024 * 1024,             # safe on v5e/v6e/v7x
        ),
        cost_estimate=cost,
        input_output_aliases=({0: 0} if (donate_x and not padded) else {}),
    )(x2d, delta2d)

    if padded:
        return out2d.reshape(-1)[:n_valid].reshape(orig_shape)
    return out2d.reshape(orig_shape)


class DiffWeightFixmaskJAX:
    """Stateful wrapper mirroring the nn.Module interface."""

    def __init__(self, diff_weight, mask):
        # PyTorch: diff_weight param <- diff_weight * mask ; mask is frozen.
        self.diff_weight = diff_weight * mask
        self.mask = mask
        self.active = True
        self._refresh_delta()

    def _refresh_delta(self):
        # forward computes `mask * diff_weight` with both operands frozen; fold it
        # once (exact for ANY mask values) and cache its lane-dense 2-D layout.
        self.delta = self.mask * self.diff_weight
        d2d, _, _ = _as_2d_lane_dense(self.delta)
        self._delta2d_cache = {jnp.dtype(self.delta.dtype): d2d}

    def _delta2d_for(self, dtype):
        dtype = jnp.dtype(dtype)
        d2d = self._delta2d_cache.get(dtype)
        if d2d is None:
            base = self._delta2d_cache[jnp.dtype(self.delta.dtype)]
            d2d = base.astype(dtype)
            self._delta2d_cache[dtype] = d2d
        return d2d

    def set_frozen(self, frozen: bool) -> None:
        # TODO(synk): requires_grad bookkeeping has no forward-pass analogue in JAX.
        pass

    def __call__(self, X, **overrides):
        if not self.active:
            return X
        return diff_weight_fixmask_forward(
            X, self.delta, delta2d=self._delta2d_for(X.dtype), active=True, **overrides)


if __name__ == "__main__":
    key = jax.random.PRNGKey(0)
    keys = jax.random.split(key, 12)

    # --- Case 1: lane-dense f32 shape (zero-copy path), kernel forced on ---
    B, R, C = 8, 64, 256
    x = jax.random.normal(keys[0], (B, R, C), dtype=jnp.float32)
    raw_dw = jax.random.normal(keys[1], (B, R, C), dtype=jnp.float32) * 0.01
    mask = (jax.random.uniform(keys[2], (B, R, C)) > 0.5).astype(jnp.float32)

    module = DiffWeightFixmaskJAX(raw_dw, mask)
    out = jax.block_until_ready(module(x, small_fast_path_bytes=0))  # force Pallas kernel
    ref = x + mask * (raw_dw * mask)
    assert out.shape == x.shape and out.dtype == x.dtype
    assert jnp.allclose(out, ref, atol=1e-6, rtol=1e-6)

    # Default call (small tensor -> XLA fast path) must agree with the kernel path.
    out_fast = jax.block_until_ready(module(x))
    assert jnp.allclose(out_fast, ref, atol=1e-6, rtol=1e-6)

    # Inactive path returns X unchanged.
    module.active = False
    out_inactive = jax.block_until_ready(module(x))
    assert jnp.array_equal(out_inactive, x)
    module.active = True

    # --- Case 2: ragged bf16 shape whose size is divisible by 128 (zero-copy reshape) ---
    R2, C2 = 48, 96  # last dim NOT a multiple of 128, but 48*96 = 4608 is divisible by 512
    x2 = jax.random.normal(keys[3], (R2, C2), dtype=jnp.bfloat16)
    raw_dw2 = (jax.random.normal(keys[4], (R2, C2), dtype=jnp.float32) * 0.01).astype(jnp.bfloat16)
    mask2 = (jax.random.uniform(keys[5], (R2, C2)) > 0.5).astype(jnp.bfloat16)

    module2 = DiffWeightFixmaskJAX(raw_dw2, mask2)
    out2 = jax.block_until_ready(module2(x2, small_fast_path_bytes=0))
    ref2 = (x2.astype(jnp.float32)
            + mask2.astype(jnp.float32) * (raw_dw2.astype(jnp.float32) * mask2.astype(jnp.float32)))
    assert out2.shape == x2.shape and out2.dtype == x2.dtype
    assert jnp.allclose(out2.astype(jnp.float32), ref2, atol=2e-2, rtol=2e-2)

    # --- Case 3: truly ragged f32 shape (flatten + pad fallback path) ---
    R3, C3 = 7, 33
    x3 = jax.random.normal(keys[6], (R3, C3), dtype=jnp.float32)
    raw_dw3 = jax.random.normal(keys[7], (R3, C3), dtype=jnp.float32) * 0.01
    mask3 = (jax.random.uniform(keys[8], (R3, C3)) > 0.5).astype(jnp.float32)
    module3 = DiffWeightFixmaskJAX(raw_dw3, mask3)
    out3 = jax.block_until_ready(module3(x3, small_fast_path_bytes=0))
    ref3 = x3 + mask3 * (raw_dw3 * mask3)
    assert out3.shape == x3.shape and jnp.allclose(out3, ref3, atol=1e-6, rtol=1e-6)

    # --- Case 4: column-tiling path (2-D grid) exercised via a tiny tile budget ---
    R4, C4 = 16, 1024
    x4 = jax.random.normal(keys[9], (R4, C4), dtype=jnp.float32)
    raw_dw4 = jax.random.normal(keys[10], (R4, C4), dtype=jnp.float32) * 0.01
    mask4 = (jax.random.uniform(keys[11], (R4, C4)) > 0.5).astype(jnp.float32)
    module4 = DiffWeightFixmaskJAX(raw_dw4, mask4)
    out4 = jax.block_until_ready(
        module4(x4, small_fast_path_bytes=0, target_tile_bytes=8192))
    ref4 = x4 + mask4 * (raw_dw4 * mask4)
    assert out4.shape == x4.shape and jnp.allclose(out4, ref4, atol=1e-6, rtol=1e-6)

    print("KERNEL_OK")
</pallas_src>

<mosaic_0001>
module attributes {stable_mosaic.version = 11 : i64} {
  func.func @_add_delta_kernel(%arg0: i32, %arg1: i32, %arg2: memref<256x256xf32, #tpu.memory_space<vmem>>, %arg3: memref<256x256xf32, #tpu.memory_space<vmem>>, %arg4: memref<256x256xf32, #tpu.memory_space<vmem>>) attributes {dimension_semantics = [#tpu.dimension_semantics<parallel>, #tpu.dimension_semantics<parallel>], iteration_bounds = array<i64: 2, 1>, scalar_prefetch = 0 : i64, scratch_operands = 0 : i64, tpu.core_type = #tpu.core_type<tc>, window_params = [{transform_indices = @transform_0, window_bounds = array<i64: 256, 256>}, {transform_indices = @transform_1, window_bounds = array<i64: 256, 256>}, {transform_indices = @transform_2, window_bounds = array<i64: 256, 256>}]} {
    %c0 = arith.constant 0 : index
    %c0_0 = arith.constant 0 : index
    %0 = vector.load %arg2[%c0, %c0_0] : memref<256x256xf32, #tpu.memory_space<vmem>>, vector<256x256xf32>
    %c0_1 = arith.constant 0 : index
    %c0_2 = arith.constant 0 : index
    %1 = vector.load %arg3[%c0_1, %c0_2] : memref<256x256xf32, #tpu.memory_space<vmem>>, vector<256x256xf32>
    %2 = arith.addf %0, %1 : vector<256x256xf32>
    %c0_3 = arith.constant 0 : index
    %c0_4 = arith.constant 0 : index
    %3 = vector.load %arg4[%c0_3, %c0_4] : memref<256x256xf32, #tpu.memory_space<vmem>>, vector<256x256xf32>
    tpu.vector_store %arg4[%c0_3, %c0_4], %2 {strides = array<i32>} : memref<256x256xf32, #tpu.memory_space<vmem>>, vector<256x256xf32>,
    return
  }
  func.func @transform_0(%arg0: i32, %arg1: i32) -> (i32, i32) {
    %c0_i32 = arith.constant 0 : i32
    return %arg0, %arg1 : i32, i32
  }
  func.func @transform_1(%arg0: i32, %arg1: i32) -> (i32, i32) {
    %c0_i32 = arith.constant 0 : i32
    return %arg0, %arg1 : i32, i32
  }
  func.func @transform_2(%arg0: i32, %arg1: i32) -> (i32, i32) {
    %c0_i32 = arith.constant 0 : i32
    return %arg0, %arg1 : i32, i32
  }
}

</mosaic_0001>

<bundles_post_ra>
// kernel: tpu_custom_call.1
= control target key start
LH: loop header
LB: loop body
LE: loop exit
PB: predicated region body
PF: predicated region fallthrough
CT: control target
= control target key end

     0   :  { %7 = vsyncpa [#allocation3], 0  ;;  %s1322_s0 = inlined_call_operand.hbm [shape: f32[512,256], index: 0, kind: input, shape index: {}]   ;;  %s1323_s1 = inlined_call_operand.hbm [shape: f32[512,256], index: 1, kind: input, shape index: {}]   ;;  %s1324_s2 = inlined_call_operand.hbm [shape: f32[512,256], index: 2, kind: output, shape index: {}]  }
   0x1   :  { %9 = vsyncpa [#allocation3 + $0x1], 0 }
   0x2   :  { %10 = vsyncpa [#allocation6], 0 }
   0x3   :  { %12 = vsyncpa [#allocation6 + $0x1], 0 }
   0x4   :  { %13 = vsyncpa [#allocation4], 0 }
   0x5   :  { %15 = vsyncpa [#allocation4 + $0x1], 0  ;;  %s887_s9 = smov 0   ;;  %s889_s10 = smov 0  }
   0x6   :  { %s891_s11 = smov 0   ;;  %s893_s12 = smov 0  }
   0x7   :  { %s895_s13 = smov 0   ;;  %s897_s14 = smov 0  }
   0x8 LB: > { %s618_s15 = sadd.s32 4294967295, %s863_s14   ;;  %s619_s16 = sadd.s32 4294967294, %s863_s14   ;;  %s863_s14 = sphi %s897_s14, %s21_s14   ;;  %s859_s13 = sphi %s895_s13, %s1342_s13   ;;  %s855_s12 = sphi %s893_s12, %s1341_s12   ;;  %s851_s11 = sphi %s891_s11, %s1340_s11   ;;  %s847_s10 = sphi %s889_s10, %s1339_s10   ;;  %s843_s9 = sphi %s887_s9, %s1338_s9  }
   0x9   : > { %s33_s17 = sadd.s32 1, %s859_s13  ;;  %s42_s18 = sadd.s32 1, %s851_s11 }
   0xa   : > { %p35_p0 = scmp.ge.s32.totalorder %s33_s17, 2  ;;  %p49_p1 = scmp.ne.s32.totalorder %s851_s11, %s847_s10 }
   0xb   : > { %p50_p2 = scmp.eq.s32.totalorder %s863_s14, 0  ;;  %p55_p3 = scmp.ne.s32.totalorder %s847_s10, %s843_s9 }
   0xc   : > { %s1344_s17 = smov (%p35_p0, %s33_s17), 0  ;;  %p56_p5 = scmp.eq.s32.totalorder %s618_s15, 0 }
   0xd   : > { %p928_p4 = por %p50_p2, %p49_p1  ;;  %s37_s20 = ssub.s32 %s859_s13, %s1344_s17 }
   0xe   : > { %p109_p6 = scmp.eq.s32.totalorder %s618_s15, 1  ;;  %p40_p7 = scmp.eq.s32.totalorder %s37_s20, 0 }
   0xf   : > { %p934_p8 = por %p56_p5, %p55_p3  ;;  %p115_p10 = scmp.eq.s32.totalorder %s619_s16, 1 }
  0x10   : > { %p938_p9 = por %p109_p6, %p49_p1  ;;  %p663_p13 = scmp.lt.s32.totalorder %s863_s14, 2 }
  0x11   : > { %s1328_s21 = scalar_select %p934_p8, 1, 0 }
  0x12   : > { %s1329_s22 = scalar_select %p938_p9, 1, 0 }
  0x13   : > { %s943_s23 = scalar_select %p40_p7, %s851_s11, %s42_s18  }
  0x14   : > { %p945_p11 = por %p115_p10, %p55_p3  ;;  %s952_s25 = sand.u32 1, %s851_s11  }
  0x15   : > { %s622_s26 = sshll.u32 %s952_s25, 9  ;;  %s641_s27 = sshll.u32 %s859_s13, 13 }
  0x16   : > { %s1330_s24 = scalar_select %p945_p11, 1, 0 }
  0x17   : > { %s961_s30 = scalar_lea.hbm %s1322_s0, %s641_s27  ;;  %s139_s3 = scalar_lea.vmem [#allocation2], %s622_s26 }
  0x18   : > { %s149_s4 = sshll.u32 %s139_s3, 4  ;;  %p969_p0 = pnand %p663_p13, %p928_p4  ;;  %s965_s4 = int_to_ptr.vmem [resolvable:$true] %s149_s4 }
  0x19   : > { %s136_s6 = scalar_lea.sflag [#allocation3], %s952_s25  ;;  %s717_s7 = scalar_lea.hbm %s961_s30, 8192 }
  0x1a   : > { %p718_p2 = scmp.ne.s32.totalorder %s961_s30, %s717_s7  ;;  %p719_p3 = pneg %p969_p0 }
  0x1b   : > { %s722_s16 = scalar_lea.hbm %s1322_s0, 16384  ;;  %p723_p4 = scmp.lt.u32.totalorder %s961_s30, %s1322_s0 }
  0x1c   : > { %p720_p5 = pnand %p719_p3, %p718_p2  ;;  %p724_p7 = scmp.lt.u32.totalorder %s722_s16, %s717_s7 }
  0x1d   : > { %p726_p13 = scmp.lt.u32.totalorder %s717_s7, %s961_s30 }
  0x1e   : > { %p721_p6 = pneg %p720_p5  ;;  %p725_p10 = por %p724_p7, %p723_p4 }
  0x20   : > { %p727_p12 = por %p726_p13, %p725_p10 }
  0x22   : > { %p728_p1 = pnand %p727_p12, %p721_p6 }
  0x24   : > { %731 = shalt.err (!%p728_p1)
}
  0x25   : > { %s732_s20 = scalar_lea.vmem %s965_s4, 8192  ;;  %s865_s28 = smov [#allocation2]  }
  0x26   : > { %p733_p2 = scmp.ne.s32.totalorder %s965_s4, %s732_s20  ;;  %s737_s29 = sshll.u32 %s865_s28, 4  ;;  %s738_s29 = int_to_ptr.vmem [resolvable:$false] %s737_s29 }
  0x27   : > { %s739_s3 = scalar_lea.vmem %s738_s29, 16384  ;;  %p740_p9 = scmp.lt.s32.totalorder %s965_s4, %s738_s29 }
  0x28   : > { %p735_p5 = pnand %p733_p2, %p719_p3  ;;  %p741_p4 = scmp.lt.s32.totalorder %s739_s3, %s732_s20 }
  0x2a   : > { %p736_p11 = pneg %p735_p5  ;;  %p742_p7 = por %p741_p4, %p740_p9 }
  0x2c   : > { %p743_p10 = pnand %p742_p7, %p736_p11 }
  0x2e   : > { %746 = shalt.err (!%p743_p10)
}
  0x2f   : > { %s866_s7 = smov 256   ;;  %s867_s8 = smov 16  }
  0x30   : > { %655 = dma.hbm_to_vmem [thread:$0]  (!%p969_p0), %s961_s30, 8192, %s965_s4, %s136_s6, %s866_s7, %s866_s7, %s867_s8  }
  0x31   : > { %p181_p9 = scmp.lt.s32.totalorder %s863_s14, 3  ;;  %s1011_s18 = scalar_lea.hbm %s1323_s1, %s641_s27 }
  0x32   : > { %p1332_p11 = scmp.ge.s32.totalorder %s863_s14, 1  ;;  %s163_s20 = scalar_lea.vmem [#allocation5], %s622_s26 }
  0x33   : > { %s173_s28 = sshll.u32 %s163_s20, 4  ;;  %s160_s30 = scalar_lea.sflag [#allocation6], %s952_s25  ;;  %s1021_s28 = int_to_ptr.vmem [resolvable:$true] %s173_s28 }
  0x34   : > { %p1015_p12 = pnand %p1332_p11, %p181_p9  ;;  %s747_s4 = scalar_lea.hbm %s1011_s18, 8192 }
  0x35   : > { %p748_p1 = scmp.ne.s32.totalorder %s1011_s18, %s747_s4  ;;  %s752_s29 = scalar_lea.hbm %s1323_s1, 16384 }
  0x36   : > { %p753_p2 = scmp.lt.u32.totalorder %s1011_s18, %s1323_s1  ;;  %p754_p5 = scmp.lt.u32.totalorder %s752_s29, %s747_s4 }
  0x37   : > { %p750_p6 = pnand %p748_p1, %p719_p3  ;;  %p756_p7 = scmp.lt.u32.totalorder %s747_s4, %s1011_s18 }
  0x38   : > { %p755_p4 = por %p754_p5, %p753_p2 }
  0x39   : > { %p751_p13 = pneg %p750_p6 }
  0x3a   : > { %p757_p10 = por %p756_p7, %p755_p4 }
  0x3c   : > { %p758_p9 = pnand %p757_p10, %p751_p13 }
  0x3e   : > { %761 = shalt.err (!%p758_p9)
}
  0x3f   : > { %s762_s26 = scalar_lea.vmem %s1021_s28, 8192  ;;  %s868_s16 = smov [#allocation5]  }
  0x40   : > { %p763_p11 = scmp.ne.s32.totalorder %s1021_s28, %s762_s26  ;;  %s767_s20 = sshll.u32 %s868_s16, 4  ;;  %s768_s20 = int_to_ptr.vmem [resolvable:$false] %s767_s20 }
  0x41   : > { %s769_s27 = scalar_lea.vmem %s768_s20, 16384  ;;  %p770_p8 = scmp.lt.s32.totalorder %s1021_s28, %s768_s20 }
  0x42   : > { %p765_p1 = pnand %p763_p11, %p719_p3  ;;  %p771_p2 = scmp.lt.s32.totalorder %s769_s27, %s762_s26 }
  0x44   : > { %p766_p6 = pneg %p765_p1  ;;  %p772_p5 = por %p771_p2, %p770_p8 }
  0x46   : > { %p773_p4 = pnand %p772_p5, %p766_p6 }
  0x48   : > { %776 = shalt.err (!%p773_p4)
}
  0x49   : > { %658 = dma.hbm_to_vmem [thread:$0]  (!%p969_p0), %s1011_s18, 8192, %s1021_s28, %s160_s30, %s866_s7, %s866_s7, %s867_s8  }
  0x4a   : > { %185 = sbr.rel (%p1015_p12) target bundleno = 152 (0x98), region = 28  ;;  %s1055_s4 = sand.u32 (!%p1015_p12), 1, %s847_s10  }
  0x4b   : > { %s631_s6 = sshll.u32 (!%p1015_p12), %s1055_s4, 9  ;;  %s188_s29 = scalar_lea.sflag (!%p1015_p12), [#allocation3], %s1055_s4 }
  0x4c   : > { %s1059_s5 = scalar_lea.vmem (!%p1015_p12), [#allocation2], %s631_s6  ;;  %p1334_p8 = scmp.ne.s32.totalorder (!%p1015_p12), %s1328_s21, 0 }
  0x51   : > { %830 = dma.done.wait (%p1334_p8), %s188_s29, 8192  }
  0x52   : > { %832 = vsyncadd (%p1334_p8), %s188_s29, 4294959104  ;;  %s197_s25 = scalar_lea.sflag [#allocation6], %s1055_s4  ;;  %s1066_s7 = scalar_lea.vmem [#allocation5], %s631_s6 }
  0x53   : > { %834 = dma.done.wait (%p1334_p8), %s197_s25, 8192  }
  0x54   : > { %836 = vsyncadd (%p1334_p8), %s197_s25, 4294959104  ;;  %v232_v0 = vld [vmem:[%s1059_s5] sm:$0xff]  ;;  %v233_v2 = vld [vmem:[%s1059_s5 + $0x8] sm:$0xff]  ;;  %s1081_s21 = scalar_lea.vmem [#allocation7], %s631_s6  ;;  %s645_s8 = sshll.u32 %s855_s12, 13 }
  0x55   : > { %v296_v1 = vld [vmem:[%s1066_s7] sm:$0xff]  ;;  %v297_v4 = vld [vmem:[%s1066_s7 + $0x8] sm:$0xff]  ;;  %v234_v5 = vld [vmem:[%s1059_s5 + $0x10] sm:$0xff]  ;;  %s505_s18 = sshll.u32 %s1081_s21, 4  ;;  %s1267_s28 = scalar_lea.hbm %s1324_s2, %s645_s8  ;;  %s1269_s18 = int_to_ptr.vmem [resolvable:$true] %s505_s18 }
  0x56   : > { %v360_v3 = vadd.f32 %v296_v1, %v232_v0  ;;  %v298_v6 = vld [vmem:[%s1066_s7 + $0x10] sm:$0xff]  ;;  %v361_v7 = vadd.f32 %v297_v4, %v233_v2  ;;  %v235_v9 = vld [vmem:[%s1059_s5 + $0x18] sm:$0xff]  ;;  %v236_v11 = vld [vmem:[%s1059_s5 + $0x20] sm:$0xff]  ;;  %s489_s30 = scalar_lea.sflag [#allocation4], %s1055_s4  ;;  %s777_s3 = scalar_lea.vmem %s1269_s18, 8192 }
  0x57   : > { %v362_v8 = vadd.f32 %v298_v6, %v234_v5  ;;  %v299_v10 = vld [vmem:[%s1066_s7 + $0x18] sm:$0xff]  ;;  %v300_v13 = vld [vmem:[%s1066_s7 + $0x20] sm:$0xff]  ;;  %v237_v14 = vld [vmem:[%s1059_s5 + $0x28] sm:$0xff]  ;;  %p778_p0 = scmp.ne.s32.totalorder %s1269_s18, %s777_s3  ;;  %p1335_p3 = scmp.ne.s32.totalorder %s1329_s22, 0 }
  0x58   : > { %424 = vst [vmem:[%s1081_s21] sm:$0xff] %v360_v3  ;;  %v363_v12 = vadd.f32 %v299_v10, %v235_v9  ;;  %v301_v15 = vld [vmem:[%s1066_s7 + $0x28] sm:$0xff]  ;;  %425 = vst [vmem:[%s1081_s21 + $0x8] sm:$0xff] %v361_v7  ;;  %v364_v16 = vadd.f32 %v300_v13, %v236_v11  ;;  %v238_v18 = vld [vmem:[%s1059_s5 + $0x30] sm:$0xff]  ;;  %s869_s15 = smov [#allocation7]  }
  0x59   : > { %426 = vst [vmem:[%s1081_s21 + $0x10] sm:$0xff] %v362_v8  ;;  %v365_v17 = vadd.f32 %v301_v15, %v237_v14  ;;  %v302_v19 = vld [vmem:[%s1066_s7 + $0x30] sm:$0xff]  ;;  %v239_v20 = vld [vmem:[%s1059_s5 + $0x38] sm:$0xff]  ;;  %v240_v23 = vld [vmem:[%s1059_s5 + $0x40] sm:$0xff]  ;;  %p779_p12 = pnand %p778_p0, %p1335_p3  ;;  %s781_s26 = sshll.u32 %s869_s15, 4  ;;  %s782_s26 = int_to_ptr.vmem [resolvable:$false] %s781_s26 }
  0x5a   : > { %427 = vst [vmem:[%s1081_s21 + $0x18] sm:$0xff] %v363_v12  ;;  %v366_v21 = vadd.f32 %v302_v19, %v238_v18  ;;  %v303_v22 = vld [vmem:[%s1066_s7 + $0x38] sm:$0xff]  ;;  %v304_v24 = vld [vmem:[%s1066_s7 + $0x40] sm:$0xff]  ;;  %428 = vst [vmem:[%s1081_s21 + $0x20] sm:$0xff] %v364_v16  ;;  %s783_s16 = scalar_lea.vmem %s782_s26, 16384  ;;  %p784_p7 = scmp.lt.s32.totalorder %s1269_s18, %s782_s26 }
  0x5b   : > { %429 = vst [vmem:[%s1081_s21 + $0x28] sm:$0xff] %v365_v17  ;;  %v367_v25 = vadd.f32 %v303_v22, %v239_v20  ;;  %v368_v26 = vadd.f32 %v304_v24, %v240_v23  ;;  %v241_v27 = vld [vmem:[%s1059_s5 + $0x48] sm:$0xff]  ;;  %v242_v29 = vld [vmem:[%s1059_s5 + $0x50] sm:$0xff]  ;;  %v243_v32 = vld [vmem:[%s1059_s5 + $0x58] sm:$0xff]  ;;  %p780_p13 = pneg %p779_p12  ;;  %p785_p10 = scmp.lt.s32.totalorder %s783_s16, %s777_s3 }
  0x5c   : > { %v305_v28 = vld [vmem:[%s1066_s7 + $0x48] sm:$0xff]  ;;  %430 = vst [vmem:[%s1081_s21 + $0x30] sm:$0xff] %v366_v21  ;;  %v306_v31 = vld [vmem:[%s1066_s7 + $0x50] sm:$0xff]  ;;  %v307_v33 = vld [vmem:[%s1066_s7 + $0x58] sm:$0xff] }
  0x5d   : > { %v369_v30 = vadd.f32 %v305_v28, %v241_v27  ;;  %431 = vst [vmem:[%s1081_s21 + $0x38] sm:$0xff] %v367_v25  ;;  %432 = vst [vmem:[%s1081_s21 + $0x40] sm:$0xff] %v368_v26  ;;  %v370_v34 = vadd.f32 %v306_v31, %v242_v29  ;;  %v371_v35 = vadd.f32 %v307_v33, %v243_v32  ;;  %v244_v36 = vld [vmem:[%s1059_s5 + $0x60] sm:$0xff]  ;;  %v245_v38 = vld [vmem:[%s1059_s5 + $0x68] sm:$0xff]  ;;  %p786_p9 = por %p785_p10, %p784_p7 }
  0x5e   : > { %v308_v37 = vld [vmem:[%s1066_s7 + $0x60] sm:$0xff]  ;;  %v309_v40 = vld [vmem:[%s1066_s7 + $0x68] sm:$0xff]  ;;  %v246_v41 = vld [vmem:[%s1059_s5 + $0x70] sm:$0xff] }
  0x5f   : > { %433 = vst [vmem:[%s1081_s21 + $0x48] sm:$0xff] %v369_v30  ;;  %v372_v39 = vadd.f32 %v308_v37, %v244_v36  ;;  %v310_v42 = vld [vmem:[%s1066_s7 + $0x70] sm:$0xff]  ;;  %434 = vst [vmem:[%s1081_s21 + $0x50] sm:$0xff] %v370_v34  ;;  %v373_v43 = vadd.f32 %v309_v40, %v245_v38  ;;  %v247_v45 = vld [vmem:[%s1059_s5 + $0x78] sm:$0xff]  ;;  %p787_p11 = pnand %p786_p9, %p780_p13 }
  0x60   : > { %435 = vst [vmem:[%s1081_s21 + $0x58] sm:$0xff] %v371_v35  ;;  %v374_v44 = vadd.f32 %v310_v42, %v246_v41  ;;  %v311_v46 = vld [vmem:[%s1066_s7 + $0x78] sm:$0xff]  ;;  %v248_v47 = vld [vmem:[%s1059_s5 + $0x80] sm:$0xff]  ;;  %v249_v50 = vld [vmem:[%s1059_s5 + $0x88] sm:$0xff] }
  0x61   : > { %436 = vst [vmem:[%s1081_s21 + $0x60] sm:$0xff] %v372_v39  ;;  %v375_v48 = vadd.f32 %v311_v46, %v247_v45  ;;  %v312_v49 = vld [vmem:[%s1066_s7 + $0x80] sm:$0xff]  ;;  %v313_v51 = vld [vmem:[%s1066_s7 + $0x88] sm:$0xff]  ;;  %437 = vst [vmem:[%s1081_s21 + $0x68] sm:$0xff] %v373_v43 }
  0x62   : > { %438 = vst [vmem:[%s1081_s21 + $0x70] sm:$0xff] %v374_v44  ;;  %v376_v52 = vadd.f32 %v312_v49, %v248_v47  ;;  %v377_v53 = vadd.f32 %v313_v51, %v249_v50  ;;  %v250_v54 = vld [vmem:[%s1059_s5 + $0x90] sm:$0xff]  ;;  %v251_v56 = vld [vmem:[%s1059_s5 + $0x98] sm:$0xff]  ;;  %v252_v59 = vld [vmem:[%s1059_s5 + $0xa0] sm:$0xff] }
  0x63   : > { %v314_v55 = vld [vmem:[%s1066_s7 + $0x90] sm:$0xff]  ;;  %439 = vst [vmem:[%s1081_s21 + $0x78] sm:$0xff] %v375_v48  ;;  %v315_v58 = vld [vmem:[%s1066_s7 + $0x98] sm:$0xff]  ;;  %v316_v60 = vld [vmem:[%s1066_s7 + $0xa0] sm:$0xff] }
  0x64   : > { %v378_v57 = vadd.f32 %v314_v55, %v250_v54  ;;  %440 = vst [vmem:[%s1081_s21 + $0x80] sm:$0xff] %v376_v52  ;;  %441 = vst [vmem:[%s1081_s21 + $0x88] sm:$0xff] %v377_v53  ;;  %v379_v61 = vadd.f32 %v315_v58, %v251_v56  ;;  %v380_v62 = vadd.f32 %v316_v60, %v252_v59  ;;  %v253_v63 = vld [vmem:[%s1059_s5 + $0xa8] sm:$0xff]  ;;  %v254_v1 = vld [vmem:[%s1059_s5 + $0xb0] sm:$0xff] }
  0x65   : > { %v317_v0 = vld [vmem:[%s1066_s7 + $0xa8] sm:$0xff]  ;;  %v318_v3 = vld [vmem:[%s1066_s7 + $0xb0] sm:$0xff]  ;;  %v255_v4 = vld [vmem:[%s1059_s5 + $0xb8] sm:$0xff] }
  0x66   : > { %442 = vst [vmem:[%s1081_s21 + $0x90] sm:$0xff] %v378_v57  ;;  %v381_v2 = vadd.f32 %v317_v0, %v253_v63  ;;  %v319_v5 = vld [vmem:[%s1066_s7 + $0xb8] sm:$0xff]  ;;  %443 = vst [vmem:[%s1081_s21 + $0x98] sm:$0xff] %v379_v61  ;;  %v382_v6 = vadd.f32 %v318_v3, %v254_v1  ;;  %v256_v8 = vld [vmem:[%s1059_s5 + $0xc0] sm:$0xff] }
  0x67   : > { %444 = vst [vmem:[%s1081_s21 + $0xa0] sm:$0xff] %v380_v62  ;;  %v383_v7 = vadd.f32 %v319_v5, %v255_v4  ;;  %v320_v9 = vld [vmem:[%s1066_s7 + $0xc0] sm:$0xff]  ;;  %v257_v10 = vld [vmem:[%s1059_s5 + $0xc8] sm:$0xff]  ;;  %v258_v13 = vld [vmem:[%s1059_s5 + $0xd0] sm:$0xff] }
  0x68   : > { %445 = vst [vmem:[%s1081_s21 + $0xa8] sm:$0xff] %v381_v2  ;;  %v384_v11 = vadd.f32 %v320_v9, %v256_v8  ;;  %v321_v12 = vld [vmem:[%s1066_s7 + $0xc8] sm:$0xff]  ;;  %v322_v14 = vld [vmem:[%s1066_s7 + $0xd0] sm:$0xff]  ;;  %446 = vst [vmem:[%s1081_s21 + $0xb0] sm:$0xff] %v382_v6 }
  0x69   : > { %447 = vst [vmem:[%s1081_s21 + $0xb8] sm:$0xff] %v383_v7  ;;  %v385_v15 = vadd.f32 %v321_v12, %v257_v10  ;;  %v386_v16 = vadd.f32 %v322_v14, %v258_v13  ;;  %v259_v17 = vld [vmem:[%s1059_s5 + $0xd8] sm:$0xff]  ;;  %v260_v19 = vld [vmem:[%s1059_s5 + $0xe0] sm:$0xff]  ;;  %v261_v22 = vld [vmem:[%s1059_s5 + $0xe8] sm:$0xff] }
  0x6a   : > { %v323_v18 = vld [vmem:[%s1066_s7 + $0xd8] sm:$0xff]  ;;  %448 = vst [vmem:[%s1081_s21 + $0xc0] sm:$0xff] %v384_v11  ;;  %v324_v21 = vld [vmem:[%s1066_s7 + $0xe0] sm:$0xff]  ;;  %v325_v23 = vld [vmem:[%s1066_s7 + $0xe8] sm:$0xff] }
  0x6b   : > { %v387_v20 = vadd.f32 %v323_v18, %v259_v17  ;;  %449 = vst [vmem:[%s1081_s21 + $0xc8] sm:$0xff] %v385_v15  ;;  %450 = vst [vmem:[%s1081_s21 + $0xd0] sm:$0xff] %v386_v16  ;;  %v388_v24 = vadd.f32 %v324_v21, %v260_v19  ;;  %v389_v25 = vadd.f32 %v325_v23, %v261_v22  ;;  %v262_v26 = vld [vmem:[%s1059_s5 + $0xf0] sm:$0xff]  ;;  %v263_v28 = vld [vmem:[%s1059_s5 + $0xf8] sm:$0xff] }
  0x6c   : > { %v326_v27 = vld [vmem:[%s1066_s7 + $0xf0] sm:$0xff]  ;;  %v327_v30 = vld [vmem:[%s1066_s7 + $0xf8] sm:$0xff]  ;;  %v264_v31 = vld [vmem:[%s1059_s5 + $0x100] sm:$0xff] }
  0x6d   : > { %451 = vst [vmem:[%s1081_s21 + $0xd8] sm:$0xff] %v387_v20  ;;  %v390_v29 = vadd.f32 %v326_v27, %v262_v26  ;;  %v328_v32 = vld [vmem:[%s1066_s7 + $0x100] sm:$0xff]  ;;  %452 = vst [vmem:[%s1081_s21 + $0xe0] sm:$0xff] %v388_v24  ;;  %v391_v33 = vadd.f32 %v327_v30, %v263_v28  ;;  %v265_v35 = vld [vmem:[%s1059_s5 + $0x108] sm:$0xff] }
  0x6e   : > { %453 = vst [vmem:[%s1081_s21 + $0xe8] sm:$0xff] %v389_v25  ;;  %v392_v34 = vadd.f32 %v328_v32, %v264_v31  ;;  %v329_v36 = vld [vmem:[%s1066_s7 + $0x108] sm:$0xff]  ;;  %v266_v37 = vld [vmem:[%s1059_s5 + $0x110] sm:$0xff]  ;;  %v267_v40 = vld [vmem:[%s1059_s5 + $0x118] sm:$0xff] }
  0x6f   : > { %454 = vst [vmem:[%s1081_s21 + $0xf0] sm:$0xff] %v390_v29  ;;  %v393_v38 = vadd.f32 %v329_v36, %v265_v35  ;;  %v330_v39 = vld [vmem:[%s1066_s7 + $0x110] sm:$0xff]  ;;  %v331_v41 = vld [vmem:[%s1066_s7 + $0x118] sm:$0xff]  ;;  %455 = vst [vmem:[%s1081_s21 + $0xf8] sm:$0xff] %v391_v33 }
  0x70   : > { %456 = vst [vmem:[%s1081_s21 + $0x100] sm:$0xff] %v392_v34  ;;  %v394_v42 = vadd.f32 %v330_v39, %v266_v37  ;;  %v395_v43 = vadd.f32 %v331_v41, %v267_v40  ;;  %v268_v44 = vld [vmem:[%s1059_s5 + $0x120] sm:$0xff]  ;;  %v269_v46 = vld [vmem:[%s1059_s5 + $0x128] sm:$0xff]  ;;  %v270_v49 = vld [vmem:[%s1059_s5 + $0x130] sm:$0xff] }
  0x71   : > { %v332_v45 = vld [vmem:[%s1066_s7 + $0x120] sm:$0xff]  ;;  %457 = vst [vmem:[%s1081_s21 + $0x108] sm:$0xff] %v393_v38  ;;  %v333_v48 = vld [vmem:[%s1066_s7 + $0x128] sm:$0xff]  ;;  %v334_v50 = vld [vmem:[%s1066_s7 + $0x130] sm:$0xff] }
  0x72   : > { %v396_v47 = vadd.f32 %v332_v45, %v268_v44  ;;  %458 = vst [vmem:[%s1081_s21 + $0x110] sm:$0xff] %v394_v42  ;;  %459 = vst [vmem:[%s1081_s21 + $0x118] sm:$0xff] %v395_v43  ;;  %v397_v51 = vadd.f32 %v333_v48, %v269_v46  ;;  %v398_v52 = vadd.f32 %v334_v50, %v270_v49  ;;  %v271_v53 = vld [vmem:[%s1059_s5 + $0x138] sm:$0xff]  ;;  %v272_v55 = vld [vmem:[%s1059_s5 + $0x140] sm:$0xff] }
  0x73   : > { %v335_v54 = vld [vmem:[%s1066_s7 + $0x138] sm:$0xff]  ;;  %v336_v57 = vld [vmem:[%s1066_s7 + $0x140] sm:$0xff]  ;;  %v273_v58 = vld [vmem:[%s1059_s5 + $0x148] sm:$0xff] }
  0x74   : > { %460 = vst [vmem:[%s1081_s21 + $0x120] sm:$0xff] %v396_v47  ;;  %v399_v56 = vadd.f32 %v335_v54, %v271_v53  ;;  %v337_v59 = vld [vmem:[%s1066_s7 + $0x148] sm:$0xff]  ;;  %461 = vst [vmem:[%s1081_s21 + $0x128] sm:$0xff] %v397_v51  ;;  %v400_v60 = vadd.f32 %v336_v57, %v272_v55  ;;  %v274_v62 = vld [vmem:[%s1059_s5 + $0x150] sm:$0xff] }
  0x75   : > { %462 = vst [vmem:[%s1081_s21 + $0x130] sm:$0xff] %v398_v52  ;;  %v401_v61 = vadd.f32 %v337_v59, %v273_v58  ;;  %v338_v63 = vld [vmem:[%s1066_s7 + $0x150] sm:$0xff]  ;;  %v275_v0 = vld [vmem:[%s1059_s5 + $0x158] sm:$0xff]  ;;  %v276_v3 = vld [vmem:[%s1059_s5 + $0x160] sm:$0xff] }
  0x76   : > { %463 = vst [vmem:[%s1081_s21 + $0x138] sm:$0xff] %v399_v56  ;;  %v402_v1 = vadd.f32 %v338_v63, %v274_v62  ;;  %v339_v2 = vld [vmem:[%s1066_s7 + $0x158] sm:$0xff]  ;;  %v340_v4 = vld [vmem:[%s1066_s7 + $0x160] sm:$0xff]  ;;  %464 = vst [vmem:[%s1081_s21 + $0x140] sm:$0xff] %v400_v60 }
  0x77   : > { %465 = vst [vmem:[%s1081_s21 + $0x148] sm:$0xff] %v401_v61  ;;  %v403_v5 = vadd.f32 %v339_v2, %v275_v0  ;;  %v404_v6 = vadd.f32 %v340_v4, %v276_v3  ;;  %v277_v7 = vld [vmem:[%s1059_s5 + $0x168] sm:$0xff]  ;;  %v278_v9 = vld [vmem:[%s1059_s5 + $0x170] sm:$0xff]  ;;  %v279_v12 = vld [vmem:[%s1059_s5 + $0x178] sm:$0xff] }
  0x78   : > { %v341_v8 = vld [vmem:[%s1066_s7 + $0x168] sm:$0xff]  ;;  %466 = vst [vmem:[%s1081_s21 + $0x150] sm:$0xff] %v402_v1  ;;  %v342_v11 = vld [vmem:[%s1066_s7 + $0x170] sm:$0xff]  ;;  %v343_v13 = vld [vmem:[%s1066_s7 + $0x178] sm:$0xff] }
  0x79   : > { %v405_v10 = vadd.f32 %v341_v8, %v277_v7  ;;  %467 = vst [vmem:[%s1081_s21 + $0x158] sm:$0xff] %v403_v5  ;;  %468 = vst [vmem:[%s1081_s21 + $0x160] sm:$0xff] %v404_v6  ;;  %v406_v14 = vadd.f32 %v342_v11, %v278_v9  ;;  %v407_v15 = vadd.f32 %v343_v13, %v279_v12  ;;  %v280_v16 = vld [vmem:[%s1059_s5 + $0x180] sm:$0xff]  ;;  %v281_v18 = vld [vmem:[%s1059_s5 + $0x188] sm:$0xff] }
  0x7a   : > { %v344_v17 = vld [vmem:[%s1066_s7 + $0x180] sm:$0xff]  ;;  %v345_v20 = vld [vmem:[%s1066_s7 + $0x188] sm:$0xff]  ;;  %v282_v21 = vld [vmem:[%s1059_s5 + $0x190] sm:$0xff] }
  0x7b   : > { %469 = vst [vmem:[%s1081_s21 + $0x168] sm:$0xff] %v405_v10  ;;  %v408_v19 = vadd.f32 %v344_v17, %v280_v16  ;;  %v346_v22 = vld [vmem:[%s1066_s7 + $0x190] sm:$0xff]  ;;  %470 = vst [vmem:[%s1081_s21 + $0x170] sm:$0xff] %v406_v14  ;;  %v409_v23 = vadd.f32 %v345_v20, %v281_v18  ;;  %v283_v25 = vld [vmem:[%s1059_s5 + $0x198] sm:$0xff] }
  0x7c   : > { %471 = vst [vmem:[%s1081_s21 + $0x178] sm:$0xff] %v407_v15  ;;  %v410_v24 = vadd.f32 %v346_v22, %v282_v21  ;;  %v347_v26 = vld [vmem:[%s1066_s7 + $0x198] sm:$0xff]  ;;  %v284_v27 = vld [vmem:[%s1059_s5 + $0x1a0] sm:$0xff]  ;;  %v285_v30 = vld [vmem:[%s1059_s5 + $0x1a8] sm:$0xff] }
  0x7d   : > { %472 = vst [vmem:[%s1081_s21 + $0x180] sm:$0xff] %v408_v19  ;;  %v411_v28 = vadd.f32 %v347_v26, %v283_v25  ;;  %v348_v29 = vld [vmem:[%s1066_s7 + $0x1a0] sm:$0xff]  ;;  %v349_v31 = vld [vmem:[%s1066_s7 + $0x1a8] sm:$0xff]  ;;  %473 = vst [vmem:[%s1081_s21 + $0x188] sm:$0xff] %v409_v23 }
  0x7e   : > { %474 = vst [vmem:[%s1081_s21 + $0x190] sm:$0xff] %v410_v24  ;;  %v412_v32 = vadd.f32 %v348_v29, %v284_v27  ;;  %v413_v33 = vadd.f32 %v349_v31, %v285_v30  ;;  %v286_v34 = vld [vmem:[%s1059_s5 + $0x1b0] sm:$0xff]  ;;  %v287_v36 = vld [vmem:[%s1059_s5 + $0x1b8] sm:$0xff]  ;;  %v288_v39 = vld [vmem:[%s1059_s5 + $0x1c0] sm:$0xff] }
  0x7f   : > { %v350_v35 = vld [vmem:[%s1066_s7 + $0x1b0] sm:$0xff]  ;;  %475 = vst [vmem:[%s1081_s21 + $0x198] sm:$0xff] %v411_v28  ;;  %v351_v38 = vld [vmem:[%s1066_s7 + $0x1b8] sm:$0xff]  ;;  %v352_v40 = vld [vmem:[%s1066_s7 + $0x1c0] sm:$0xff] }
  0x80   : > { %v414_v37 = vadd.f32 %v350_v35, %v286_v34  ;;  %476 = vst [vmem:[%s1081_s21 + $0x1a0] sm:$0xff] %v412_v32  ;;  %477 = vst [vmem:[%s1081_s21 + $0x1a8] sm:$0xff] %v413_v33  ;;  %v415_v41 = vadd.f32 %v351_v38, %v287_v36  ;;  %v416_v42 = vadd.f32 %v352_v40, %v288_v39  ;;  %v289_v43 = vld [vmem:[%s1059_s5 + $0x1c8] sm:$0xff]  ;;  %v290_v45 = vld [vmem:[%s1059_s5 + $0x1d0] sm:$0xff] }
  0x81   : > { %v353_v44 = vld [vmem:[%s1066_s7 + $0x1c8] sm:$0xff]  ;;  %v354_v47 = vld [vmem:[%s1066_s7 + $0x1d0] sm:$0xff]  ;;  %v291_v48 = vld [vmem:[%s1059_s5 + $0x1d8] sm:$0xff] }
  0x82   : > { %478 = vst [vmem:[%s1081_s21 + $0x1b0] sm:$0xff] %v414_v37  ;;  %v417_v46 = vadd.f32 %v353_v44, %v289_v43  ;;  %v355_v49 = vld [vmem:[%s1066_s7 + $0x1d8] sm:$0xff]  ;;  %479 = vst [vmem:[%s1081_s21 + $0x1b8] sm:$0xff] %v415_v41  ;;  %v418_v50 = vadd.f32 %v354_v47, %v290_v45  ;;  %v292_v52 = vld [vmem:[%s1059_s5 + $0x1e0] sm:$0xff] }
  0x83   : > { %480 = vst [vmem:[%s1081_s21 + $0x1c0] sm:$0xff] %v416_v42  ;;  %v419_v51 = vadd.f32 %v355_v49, %v291_v48  ;;  %v356_v53 = vld [vmem:[%s1066_s7 + $0x1e0] sm:$0xff]  ;;  %v293_v54 = vld [vmem:[%s1059_s5 + $0x1e8] sm:$0xff]  ;;  %v294_v57 = vld [vmem:[%s1059_s5 + $0x1f0] sm:$0xff] }
  0x84   : > { %481 = vst [vmem:[%s1081_s21 + $0x1c8] sm:$0xff] %v417_v46  ;;  %v420_v55 = vadd.f32 %v356_v53, %v292_v52  ;;  %v357_v56 = vld [vmem:[%s1066_s7 + $0x1e8] sm:$0xff]  ;;  %v358_v58 = vld [vmem:[%s1066_s7 + $0x1f0] sm:$0xff]  ;;  %482 = vst [vmem:[%s1081_s21 + $0x1d0] sm:$0xff] %v418_v50 }
  0x85   : > { %483 = vst [vmem:[%s1081_s21 + $0x1d8] sm:$0xff] %v419_v51  ;;  %v421_v59 = vadd.f32 %v357_v56, %v293_v54  ;;  %v422_v60 = vadd.f32 %v358_v58, %v294_v57  ;;  %v295_v61 = vld [vmem:[%s1059_s5 + $0x1f8] sm:$0xff] }
  0x86   : > { %v359_v62 = vld [vmem:[%s1066_s7 + $0x1f8] sm:$0xff]  ;;  %484 = vst [vmem:[%s1081_s21 + $0x1e0] sm:$0xff] %v420_v55 }
  0x87   : > { %v423_v63 = vadd.f32 %v359_v62, %v295_v61  ;;  %485 = vst [vmem:[%s1081_s21 + $0x1e8] sm:$0xff] %v421_v59  ;;  %486 = vst [vmem:[%s1081_s21 + $0x1f0] sm:$0xff] %v422_v60 }
  0x89   : > { %487 = vst [vmem:[%s1081_s21 + $0x1f8] sm:$0xff] %v423_v63 }
  0x8a   : > { %790 = shalt.err (!%p787_p11)
}
  0x8b   : > { %s791_s20 = scalar_lea.hbm %s1267_s28, 8192  ;;  %s795_s29 = scalar_lea.hbm %s1324_s2, 16384 }
  0x8c   : > { %p792_p1 = scmp.ne.s32.totalorder %s1267_s28, %s791_s20  ;;  %p796_p5 = scmp.lt.u32.totalorder %s1267_s28, %s1324_s2 }
  0x8d   : > { %p797_p4 = scmp.lt.u32.totalorder %s795_s29, %s791_s20  ;;  %p799_p0 = scmp.lt.u32.totalorder %s791_s20, %s1267_s28 }
  0x8e   : > { %p793_p6 = pnand %p792_p1, %p1335_p3 }
  0x8f   : > { %p798_p8 = por %p797_p4, %p796_p5 }
  0x90   : > { %p794_p2 = pneg %p793_p6 }
  0x91   : > { %p800_p12 = por %p799_p0, %p798_p8 }
  0x93   : > { %p801_p13 = pnand %p800_p12, %p794_p2 }
  0x95   : > { %804 = shalt.err (!%p801_p13)
}
  0x96   : > { %s870_s7 = smov 256   ;;  %s871_s21 = smov 16  }
  0x97   : > { %650 = dma.vmem_to_hbm [thread:$0]  (%p1335_p3), %s1269_s18, 8192, %s1267_s28, %s489_s30, %s870_s7, %s870_s7, %s871_s21  }
  0x98 PF: > { %s520_s8 = sand.u32 1, %s843_s9   ;;  %p1336_p7 = scmp.ne.s32.totalorder %s1330_s24, 0 }
  0x99   : > { %p1337_p10 = scmp.ge.s32.totalorder %s863_s14, 2  ;;  %s521_s12 = scalar_lea.sflag [#allocation4], %s520_s8 }
  0x9b   : > { %p660_p9 = pnand %p1337_p10, %p1336_p7 }
  0x9d   : > { %838 = dma.done.wait (!%p660_p9), %s521_s12, 8192  }
  0x9e   : > { %840 = vsyncadd (!%p660_p9), %s521_s12, 4294959104  ;;  %s21_s14 = sadd.s32 1, %s863_s14   ;;  %s1338_s9 = smov %s847_s10 }
  0x9f   : > { %p18_p11 = scmp.ge.s32.totalorder %s21_s14, 4   ;;  %s1339_s10 = smov %s851_s11 }
  0xa0   : > { %s1340_s11 = smov %s943_s23  ;;  %s1341_s12 = smov %s859_s13 }
  0xa1   : > { %s1342_s13 = smov %s1344_s17  ;;  %20 = sbr.rel (!%p18_p11) target bundleno = 8 (0x8), region = 86 }
  0xa8   :  { %526 = vsyncpa [#allocation3], 1 }
  0xa9   :  { %528 = vsyncpa [#allocation3 + $0x1], 1 }
  0xaa   :  { %529 = vsyncpa [#allocation6], 1 }
  0xab   :  { %531 = vsyncpa [#allocation6 + $0x1], 1 }
  0xac   :  { %532 = vsyncpa [#allocation4], 1 }
  0xad   :  { %534 = vsyncpa [#allocation4 + $0x1], 1 }

</bundles_post_ra>
